<compile_context>
chip_gen: v6e
topology: v6e:2x2x1
jax: 0.10.0
libtpu: 0.0.40
codegen_flags: <defaults>
</compile_context>

<pallas_src>
import jax
import jax.numpy as jnp
from jax.experimental import pallas as pl
from jax.experimental.pallas import tpu as pltpu


def _round_up(x, m):
    return (x + m - 1) // m * m


def _cdiv(a, b):
    return -(-a // b)


def mlp_kernel(x_ref, w1_ref, b1_ref, w2_ref, b2_ref, o_ref):
    # Hidden layer: Linear on the MXU (f32 accumulation), bias + ReLU on the
    # VPU in f32.
    h = jnp.dot(x_ref[...], w1_ref[...], preferred_element_type=jnp.float32)
    h = jnp.maximum(h + b1_ref[...], 0.0)                  # b1 is (1, H_pad)
    # Output layer: feed the MXU in the weights' (narrow) dtype, accumulate f32.
    q = jnp.dot(h.astype(w2_ref.dtype), w2_ref[...],
                preferred_element_type=jnp.float32)
    o_ref[...] = (q + b2_ref[...]).astype(o_ref.dtype)     # lane-unpadded store


def prepare_params(w1, b1, w2, b2, compute_dtype=jnp.bfloat16):
    """Pad/cast the parameters ONCE (hoisted out of the per-forward path).

    w1: (inputSize, 30); b1: (30,) or (1, 30);
    w2: (30, actionSize); b2: (actionSize,) or (1, actionSize).
    Padded entries are exactly zero, so the math is unchanged.
    """
    in_size, hidden = w1.shape
    action_size = w2.shape[1]
    in_pad = _round_up(in_size, 8)        # sublane-aligned contraction dim
    hid_pad = _round_up(hidden, 128)      # lane-dense hidden (MXU-friendly)

    w1_p = jnp.zeros((in_pad, hid_pad), compute_dtype)
    w1_p = w1_p.at[:in_size, :hidden].set(w1.astype(compute_dtype))
    b1_p = jnp.zeros((1, hid_pad), jnp.float32)
    b1_p = b1_p.at[:, :hidden].set(b1.reshape(1, -1).astype(jnp.float32))
    # Output lane dim deliberately left UNPADDED so only actionSize useful
    # lanes ever hit HBM on the store side.
    w2_p = jnp.zeros((hid_pad, action_size), compute_dtype)
    w2_p = w2_p.at[:hidden, :].set(w2.astype(compute_dtype))
    b2_p = b2.reshape(1, -1).astype(jnp.float32)
    return w1_p, b1_p, w2_p, b2_p


@jax.jit
def net_forward(state, w1_p, b1_p, w2_p, b2_p):
    """state: (B, inputSize) -> (B, actionSize) float32."""
    B, in_size = state.shape
    in_pad, hid_pad = w1_p.shape
    action_size = w2_p.shape[1]
    compute_dtype = w1_p.dtype

    # ---- batch tiling: large tiles, even grid when tiled (v7x megacore) ----
    TB_CAP = 4096
    B8 = _round_up(max(B, 1), 8)
    if B8 <= 8:
        grid_len, TB = 1, B8
    else:
        grid_len = max(2, _cdiv(B8, TB_CAP))
        if grid_len % 2:                      # balanced split across 2 TCs
            grid_len += 1
        TB = _round_up(_cdiv(B8, grid_len), 8)
    B_pad = TB * grid_len

    x = state.astype(compute_dtype)
    pad_b, pad_f = B_pad - B, in_pad - in_size
    if pad_b or pad_f:
        x = jnp.pad(x, ((0, pad_b), (0, pad_f)))

    itemsize = jnp.dtype(compute_dtype).itemsize
    cost = pl.CostEstimate(
        flops=2 * B_pad * (in_pad * hid_pad + hid_pad * action_size),
        transcendentals=0,
        bytes_accessed=(x.size * itemsize
                        + (w1_p.size + w2_p.size) * itemsize
                        + (b1_p.size + b2_p.size) * 4
                        + B_pad * action_size * 4),
    )

    out = pl.pallas_call(
        mlp_kernel,
        out_shape=jax.ShapeDtypeStruct((B_pad, action_size), jnp.float32),
        grid=(grid_len,),
        in_specs=[
            # state streams per batch tile (double-buffered by Pallas)
            pl.BlockSpec((TB, in_pad), lambda i: (i, 0)),
            # weights/biases: constant index_map -> VMEM-resident
            pl.BlockSpec((in_pad, hid_pad), lambda i: (0, 0)),
            pl.BlockSpec((1, hid_pad), lambda i: (0, 0)),
            pl.BlockSpec((hid_pad, action_size), lambda i: (0, 0)),
            pl.BlockSpec((1, action_size), lambda i: (0, 0)),
        ],
        out_specs=pl.BlockSpec((TB, action_size), lambda i: (i, 0)),
        compiler_params=pltpu.CompilerParams(
            dimension_semantics=("parallel",),     # shard batch across TCs on v7x
            vmem_limit_bytes=32 * 1024 * 1024,
        ),
        cost_estimate=cost,
    )(x, w1_p, b1_p, w2_p, b2_p)

    # Strip batch padding only (output is already lane-unpadded).
    return out[:B]


def init_params(key, input_size, hidden, action_size):
    """Deterministic init mimicking nn.Linear's U(-1/sqrt(fan_in), 1/sqrt(fan_in))."""
    k1, k2, k3, k4 = jax.random.split(key, 4)
    bound1 = 1.0 / jnp.sqrt(jnp.float32(input_size))
    bound2 = 1.0 / jnp.sqrt(jnp.float32(hidden))
    w1 = jax.random.uniform(k1, (input_size, hidden), jnp.float32, -bound1, bound1)
    b1 = jax.random.uniform(k2, (1, hidden), jnp.float32, -bound1, bound1)
    w2 = jax.random.uniform(k3, (hidden, action_size), jnp.float32, -bound2, bound2)
    b2 = jax.random.uniform(k4, (1, action_size), jnp.float32, -bound2, bound2)
    return w1, b1, w2, b2


def _ref_forward(state, w1, b1, w2, b2, compute_dtype):
    """Plain-JAX reference with the SAME dtype casts as the kernel."""
    h = jnp.dot(state.astype(compute_dtype), w1.astype(compute_dtype),
                preferred_element_type=jnp.float32)
    h = jnp.maximum(h + b1.reshape(1, -1).astype(jnp.float32), 0.0)
    q = jnp.dot(h.astype(compute_dtype), w2.astype(compute_dtype),
                preferred_element_type=jnp.float32)
    return q + b2.reshape(1, -1).astype(jnp.float32)


if __name__ == "__main__":
    input_size = 8       # inputSize
    hidden = 30          # fixed by the module
    action_size = 4      # actionSize
    batch = 2

    key = jax.random.PRNGKey(0)
    k_x, k_p = jax.random.split(key)
    state = jax.random.normal(k_x, (batch, input_size), jnp.float32)
    w1, b1, w2, b2 = init_params(k_p, input_size, hidden, action_size)

    # Pad/cast the parameters once (hoisted out of the per-call path).
    params = prepare_params(w1, b1, w2, b2, compute_dtype=jnp.bfloat16)

    # Small-batch forward.
    q_values = net_forward(state, *params)
    jax.block_until_ready(q_values)
    assert q_values.shape == (batch, action_size)

    # Tight check vs. dtype-matched reference; loose check vs. pure-f32 module math.
    ref_match = _ref_forward(state, w1, b1, w2, b2, jnp.bfloat16)
    assert jnp.allclose(q_values, ref_match, atol=2e-3, rtol=2e-3)
    ref_f32 = jnp.maximum(state @ w1 + b1, 0.0) @ w2 + b2
    assert jnp.allclose(q_values, ref_f32, atol=5e-2, rtol=5e-2)

    # Larger batch: exercises the multi-tile, even-grid path.
    big_batch = 1500
    big_state = jax.random.normal(jax.random.PRNGKey(1), (big_batch, input_size),
                                  jnp.float32)
    q_big = net_forward(big_state, *params)
    jax.block_until_ready(q_big)
    assert q_big.shape == (big_batch, action_size)
    ref_big = _ref_forward(big_state, w1, b1, w2, b2, jnp.bfloat16)
    assert jnp.allclose(q_big, ref_big, atol=2e-3, rtol=2e-3)

    print("KERNEL_OK")
</pallas_src>

<mosaic_0001>
module attributes {stable_mosaic.version = 11 : i64} {
  func.func @mlp_kernel(%arg0: i32, %arg1: memref<8x8xbf16, #tpu.memory_space<vmem>>, %arg2: memref<8x128xbf16, #tpu.memory_space<vmem>>, %arg3: memref<1x128xf32, #tpu.memory_space<vmem>>, %arg4: memref<128x4xbf16, #tpu.memory_space<vmem>>, %arg5: memref<1x4xf32, #tpu.memory_space<vmem>>, %arg6: memref<8x4xf32, #tpu.memory_space<vmem>>) attributes {dimension_semantics = [#tpu.dimension_semantics<parallel>], iteration_bounds = array<i64: 1>, scalar_prefetch = 0 : i64, scratch_operands = 0 : i64, tpu.core_type = #tpu.core_type<tc>, window_params = [{transform_indices = @transform_0, window_bounds = array<i64: 8, 8>}, {pipeline_mode = #tpu.pipeline_mode<synchronous>, transform_indices = @transform_1, window_bounds = array<i64: 8, 128>}, {pipeline_mode = #tpu.pipeline_mode<synchronous>, transform_indices = @transform_2, window_bounds = array<i64: 1, 128>}, {pipeline_mode = #tpu.pipeline_mode<synchronous>, transform_indices = @transform_3, window_bounds = array<i64: 128, 4>}, {pipeline_mode = #tpu.pipeline_mode<synchronous>, transform_indices = @transform_4, window_bounds = array<i64: 1, 4>}, {transform_indices = @transform_5, window_bounds = array<i64: 8, 4>}]} {
    %c0 = arith.constant 0 : index
    %c0_0 = arith.constant 0 : index
    %0 = vector.load %arg1[%c0, %c0_0] : memref<8x8xbf16, #tpu.memory_space<vmem>>, vector<8x8xbf16>
    %c0_1 = arith.constant 0 : index
    %c0_2 = arith.constant 0 : index
    %1 = vector.load %arg2[%c0_1, %c0_2] : memref<8x128xbf16, #tpu.memory_space<vmem>>, vector<8x128xbf16>
    %cst = arith.constant dense<0.000000e+00> : vector<8x128xf32>
    %2 = tpu.matmul %0, %1, %cst {dimension_numbers = #tpu.dot_dimension_numbers<[1], [0], [0], [1], [0, 0, 1, 1], [], []>} : vector<8x8xbf16>, vector<8x128xbf16>, vector<8x128xf32> -> vector<8x128xf32>
    %c0_3 = arith.constant 0 : index
    %c0_4 = arith.constant 0 : index
    %3 = vector.load %arg3[%c0_3, %c0_4] : memref<1x128xf32, #tpu.memory_space<vmem>>, vector<1x128xf32>
    %4 = vector.broadcast %3 : vector<1x128xf32> to vector<8x128xf32>
    %5 = arith.addf %2, %4 : vector<8x128xf32>
    %cst_5 = arith.constant 0.000000e+00 : f32
    %6 = vector.broadcast %cst_5 : f32 to vector<8x128xf32>
    %7 = arith.maximumf %5, %6 : vector<8x128xf32>
    %8 = arith.truncf %7 : vector<8x128xf32> to vector<8x128xbf16>
    %c0_6 = arith.constant 0 : index
    %c0_7 = arith.constant 0 : index
    %9 = vector.load %arg4[%c0_6, %c0_7] : memref<128x4xbf16, #tpu.memory_space<vmem>>, vector<128x4xbf16>
    %cst_8 = arith.constant dense<0.000000e+00> : vector<8x4xf32>
    %10 = tpu.matmul %8, %9, %cst_8 {dimension_numbers = #tpu.dot_dimension_numbers<[1], [0], [0], [1], [0, 0, 1, 1], [], []>} : vector<8x128xbf16>, vector<128x4xbf16>, vector<8x4xf32> -> vector<8x4xf32>
    %c0_9 = arith.constant 0 : index
    %c0_10 = arith.constant 0 : index
    %11 = vector.load %arg5[%c0_9, %c0_10] : memref<1x4xf32, #tpu.memory_space<vmem>>, vector<1x4xf32>
    %12 = vector.broadcast %11 : vector<1x4xf32> to vector<8x4xf32>
    %13 = arith.addf %10, %12 : vector<8x4xf32>
    %c0_11 = arith.constant 0 : index
    %c0_12 = arith.constant 0 : index
    %14 = vector.load %arg6[%c0_11, %c0_12] : memref<8x4xf32, #tpu.memory_space<vmem>>, vector<8x4xf32>
    tpu.vector_store %arg6[%c0_11, %c0_12], %13 {strides = array<i32>} : memref<8x4xf32, #tpu.memory_space<vmem>>, vector<8x4xf32>,
    return
  }
  func.func @transform_0(%arg0: i32) -> (i32, i32) {
    %c0_i32 = arith.constant 0 : i32
    %c0_i32_0 = arith.constant 0 : i32
    return %arg0, %c0_i32 : i32, i32
  }
  func.func @transform_1(%arg0: i32) -> (i32, i32) {
    %c0_i32 = arith.constant 0 : i32
    %c0_i32_0 = arith.constant 0 : i32
    %c0_i32_1 = arith.constant 0 : i32
    return %c0_i32, %c0_i32_0 : i32, i32
  }
  func.func @transform_2(%arg0: i32) -> (i32, i32) {
    %c0_i32 = arith.constant 0 : i32
    %c0_i32_0 = arith.constant 0 : i32
    %c0_i32_1 = arith.constant 0 : i32
    return %c0_i32, %c0_i32_0 : i32, i32
  }
  func.func @transform_3(%arg0: i32) -> (i32, i32) {
    %c0_i32 = arith.constant 0 : i32
    %c0_i32_0 = arith.constant 0 : i32
    %c0_i32_1 = arith.constant 0 : i32
    return %c0_i32, %c0_i32_0 : i32, i32
  }
  func.func @transform_4(%arg0: i32) -> (i32, i32) {
    %c0_i32 = arith.constant 0 : i32
    %c0_i32_0 = arith.constant 0 : i32
    %c0_i32_1 = arith.constant 0 : i32
    return %c0_i32, %c0_i32_0 : i32, i32
  }
  func.func @transform_5(%arg0: i32) -> (i32, i32) {
    %c0_i32 = arith.constant 0 : i32
    %c0_i32_0 = arith.constant 0 : i32
    return %arg0, %c0_i32 : i32, i32
  }
}

</mosaic_0001>

<bundles_post_ra>
// kernel: net_forward.1
= control target key start
LH: loop header
LB: loop body
LE: loop exit
PB: predicated region body
PF: predicated region fallthrough
CT: control target
= control target key end

     0   :  { %vm34_vm0 = vcmask 1043456   ;;  %v255_v0 = vmov 0.0   ;;  %vm256_vm1 = vmmov 0   ;;  %vm30_vm2 = vcmask 64512   ;;  %s326_s1 = inlined_call_operand.vmem [shape: bf16[8,128], index: 1, kind: input, shape index: {}]   ;;  %s327_s0 = inlined_call_operand.vmem [shape: bf16[8,8], index: 0, kind: input, shape index: {}]   ;;  %s328_s3 = inlined_call_operand.vmem [shape: bf16[128,4], index: 3, kind: input, shape index: {}]   ;;  %s329_s2 = inlined_call_operand.vmem [shape: f32[1,128], index: 2, kind: input, shape index: {}]   ;;  %s330_s4 = inlined_call_operand.vmem [shape: f32[1,4], index: 4, kind: input, shape index: {}]   ;;  %s331_s5 = inlined_call_operand.vmem [shape: f32[8,4], index: 5, kind: output, shape index: {}]  }
   0x1   :  { %219 = vmatprep.subr.bf16.mxu0 %v255_v0  ;;  %v22_v1 = vld [vmem:[%s326_s1] sm:$0xf]  ;;  %221 = vmatprep.mubr.msk.bf16.mxu0 %vm256_vm1, %v255_v0  ;;  %v247_v3 = vld [vmem:[%s328_s3 + $0x38] sm:$0xff]   ;;  %v248_v5 = vld [vmem:[%s328_s3 + $0x30] sm:$0xff]   ;;  %vm191_vm3 = vcmask 31744  }
   0x2   :  { %v36_v2 = vsel %vm34_vm0, %v22_v1, 0  ;;  %225 = vmatprep.subr.bf16.mxu1 %v255_v0  ;;  %241 = vmatprep.mubr.msk.bf16.mxu1 %vm256_vm1, %v255_v0  ;;  %v21_v4 = vld [vmem:[%s327_s0] sm:$0xf]  ;;  %v249_v6 = vld [vmem:[%s328_s3 + $0x28] sm:$0xff]   ;;  %v251_v8 = vld [vmem:[%s328_s3 + $0x18] sm:$0xff]  }
   0x3   :  { %220 = vmatpush3.bf16.msra.mxu0 %v36_v2  ;;  %226 = vmatpush3.bf16.msra.mxu1 %v247_v3  ;;  %v250_v7 = vld [vmem:[%s328_s3 + $0x20] sm:$0xff]   ;;  %v252_v9 = vld [vmem:[%s328_s3 + $0x10] sm:$0xff]   ;;  %v253_v10 = vld [vmem:[%s328_s3 + $0x8] sm:$0xff]  }
   0x4   :  { %227 = vmatprep.subr.bf16.mxu1 %v255_v0  ;;  %v254_v11 = vld [vmem:[%s328_s3] sm:$0xff]  }
   0x5   :  { %v197_v12 = vld [vmem:[%s329_s2] ss:$0 sm:$0xff] }
   0x6   :  { %222 = vmatmul.mubr.msk.bf16.vlgmr.msra.gmra.mxu0 %vm30_vm2, %v21_v4  ;;  %v199_v20 = vld [vmem:[%s330_s4] ss:$0 sm:$0xff] }
   0x7   :  { %228 = vmatpush3.bf16.msra.mxu1 %v248_v5 }
   0x8   :  { %229 = vmatprep.subr.bf16.mxu1 %v255_v0 }
   0xb   :  { %230 = vmatpush3.bf16.msra.mxu1 %v249_v6 }
   0xc   :  { %231 = vmatprep.subr.bf16.mxu1 %v255_v0 }
   0xf   :  { %232 = vmatpush3.bf16.msra.mxu1 %v250_v7 }
  0x10   :  { %233 = vmatprep.subr.bf16.mxu1 %v255_v0 }
  0x13   :  { %234 = vmatpush3.bf16.msra.mxu1 %v251_v8 }
  0x14   :  { %235 = vmatprep.subr.bf16.mxu1 %v255_v0 }
  0x17   :  { %236 = vmatpush3.bf16.msra.mxu1 %v252_v9 }
  0x18   :  { %237 = vmatprep.subr.bf16.mxu1 %v255_v0 }
  0x1b   :  { %238 = vmatpush3.bf16.msra.mxu1 %v253_v10 }
  0x1c   :  { %239 = vmatprep.subr.bf16.mxu1 %v255_v0 }
  0x1f   :  { %240 = vmatpush3.bf16.msra.mxu1 %v254_v11 }
  0xc6   :  { %v72_v13 = vpop.f32.mrf.mxu0 }
  0xc7   :  { %v73_v14 = vadd.f32 %v197_v12, %v72_v13 }
  0xc8   :  { %v223_v15 = vpop.f32.mrf.mxu0 }
  0xc9   :  { %v78_v16 = vmax.f32 %v73_v14, 0.0 }
  0xca   :  { %v75_v17 = vpop.f32.mrf.mxu0 }
  0xcb   :  { %v79_v18 = vpack.c.bf16 %v78_v16, %v78_v16 }
  0xcc   :  { %v224_v19 = vpop.f32.mrf.mxu0 }
  0xcd   :  { %242 = vmatmul.mubr.bf16.vlgmr.msra.gmra.mxu1 %v79_v18 }
 0x18d   :  { %v185_v21 = vpop.f32.mrf.mxu1 }
 0x18e   :  { %v186_v22 = vadd.f32 %v199_v20, %v185_v21 }
 0x18f   :  { %v243_v23 = vpop.f32.mrf.mxu1 }
 0x190   :  { %192 = vst.msk [vmem:[%s331_s5] sm:$0xff] %vm191_vm3, %v186_v22 }
 0x191   :  { %v188_v24 = vpop.f32.mrf.mxu1 }
 0x193   :  { %v244_v25 = vpop.f32.mrf.mxu1 }

</bundles_post_ra>
